<compile_context>
chip_gen: v7x
topology: tpu7x:2x2x1
jax: 0.10.0
libtpu: 0.0.40
codegen_flags: <defaults>
</compile_context>

<pallas_src>
import numpy as np
import jax
import jax.numpy as jnp
from jax import lax
from jax.experimental import pallas as pl
from jax.experimental.pallas import tpu as pltpu

# ---- "hyp" constants (pytorch_disco hyperparameters), fixed deterministically ----
EMB_3D_NUM_SAMPLES = 32
EMB_3D_MINDIST = 0.0          # -> the random-permutation branch of sample_embs
EMB_3D_ML_COEFF = 1.0
EMB_3D_L2_COEFF = 0.1
EMB_3D_SMOOTH_COEFF = 0.01
EPS = 1e-6                    # utils_basic.reduce_masked_mean epsilon

BATCH_K = 2                   # EmbNet3D.batch_k
BETA = 1.2                    # EmbNet3D.beta
MARGIN = 0.2                  # utils_misc.MarginLoss default margin
CUTOFF = 0.5                  # utils_misc.DistanceWeightedSampling defaults
NONZERO_LOSS_CUTOFF = 1.4


# -----------------------------------------------------------------------------
# Kernel 1: volume reductions (masked L2 loss + gradient3D smoothness loss sums)
#   grid = (B, n_d_tiles); both axes 'parallel' (every step independent).
#   Each step writes one lane-dense (8,128) tile of 4 partial sums.
# -----------------------------------------------------------------------------
def _make_volume_kernel(td, W, HW, D, has_halo):
    def kernel(e_ref, g_ref, vis_ref, wmask_ref, *rest):
        if has_halo:
            halo_ref, out_ref = rest
        else:
            (out_ref,) = rest

        e = e_ref[0].astype(jnp.float32)            # (C, td, HW)
        g = g_ref[0].astype(jnp.float32)            # (C, td, HW)
        vis = vis_ref[0, 0].astype(jnp.float32)     # (td, HW)
        wmask = wmask_ref[...]                      # (1, HW)

        # masked L2: channel-reduce first (VPU adds over the major C axis), then mask.
        diff = e - g
        sq = jnp.sum(diff * diff, axis=0)           # (td, HW)
        s_l2 = jnp.sum(sq * vis)
        s_vis = jnp.sum(vis)

        # valid_g = any(nonzero over channels); exact-zero test (cast preserves zeros).
        valid = jnp.max(jnp.where(g != 0.0, 1.0, 0.0), axis=0)    # (td, HW)
        s_vg = jnp.sum(valid)

        # gradient3D(emb_g, absolute=True), channel-summed, masked at the lower index.
        s_sm = jnp.zeros((), jnp.float32)
        if W > 1:
            # W-gradient: lane shift by 1; wmask zeroes the h-row wrap positions.
            dx = jnp.sum(jnp.abs(g[:, :, 1:] - g[:, :, :-1]), axis=0)     # (td, HW-1)
            s_sm = s_sm + jnp.sum(dx * (valid[:, : HW - 1] * wmask[:, : HW - 1]))
        if HW > W:
            # H-gradient: lane shift by W; positions 0..HW-W-1 are all interior.
            dy = jnp.sum(jnp.abs(g[:, :, W:] - g[:, :, :-W]), axis=0)     # (td, HW-W)
            s_sm = s_sm + jnp.sum(dy * valid[:, : HW - W])

        # D-gradient (forward form): |g[d+1]-g[d]| * valid[d], only for global d < D-1
        # (matches gradient3D's zero-padded trailing slice; also masks zero-padded D).
        if has_halo:
            j = pl.program_id(1)
            rowd = j * td + lax.broadcasted_iota(jnp.int32, (td, 1), 0)
            wz = valid * jnp.where(rowd < D - 1, 1.0, 0.0)
        else:
            wz = valid
        if td > 1:
            dz = jnp.sum(jnp.abs(g[:, 1:, :] - g[:, :-1, :]), axis=0)     # (td-1, HW)
            s_sm = s_sm + jnp.sum(dz * wz[: td - 1])
        if has_halo:
            # cross-tile boundary diff against the next tile's first slab (halo input).
            gh = halo_ref[0][:, :1, :].astype(jnp.float32)                # (C, 1, HW)
            dzh = jnp.sum(jnp.abs(gh - g[:, td - 1:, :]), axis=0)         # (1, HW)
            s_sm = s_sm + jnp.sum(dzh * wz[td - 1:])

        # one lane-dense (8,128) partial tile per grid step; wrapper sums over (B, n_d).
        row = lax.broadcasted_iota(jnp.int32, (8, 128), 0)
        out_ref[0, 0] = (jnp.where(row == 0, s_l2, 0.0)
                         + jnp.where(row == 1, s_vis, 0.0)
                         + jnp.where(row == 2, s_sm, 0.0)
                         + jnp.where(row == 3, s_vg, 0.0))

    return kernel


def _vmem_capacity_bytes():
    try:
        cap = getattr(pltpu.get_tpu_info(), "vmem_capacity_bytes", None)
        if cap:
            return int(cap)
    except Exception:
        pass
    return 64 * 1024 * 1024    # conservative fallback (v7x-sized VMEM)


def _pick_d_tile(D, slab_bytes, budget_bytes, align):
    """Choose the D-tile size. Returns (td, d_pad)."""
    td_budget = max(1, budget_bytes // max(1, slab_bytes))
    if td_budget >= D:
        return D, D                               # single tile: no pad, no halo
    td = max(align, (td_budget // align) * align)  # sublane-aligned tile
    cand = td
    while cand >= align and cand * 2 >= td:        # prefer a divisor: no zero-pad copy
        if D % cand == 0:
            return cand, D
        cand -= align
    d_pad = ((D + td - 1) // td) * td              # zero-pad D; masked in-kernel
    return td, d_pad


def _volume_sums(emb_e, emb_g, vis_g, block_budget_bytes=None):
    """Masked-L2 / visibility / smoothness / valid_g sums over the whole volume."""
    B, C, D, H, W = emb_e.shape
    HW = H * W

    # Lane-dense layout: flatten (H, W) into the minor (128-lane) dim; free reshape.
    # Inputs keep their native dtype (bf16 OK) and are cast per-tile inside the kernel.
    e = emb_e.reshape(B, C, D, HW)
    g = emb_g.reshape(B, C, D, HW)
    v = vis_g.reshape(B, 1, D, HW)

    cap = _vmem_capacity_bytes()
    if block_budget_bytes is None:
        # bigger tiles on the 128 MiB parts (v5e/v6e), smaller on v7x's 64 MiB.
        block_budget_bytes = int(min(8 << 20, max(1 << 20, cap // 24)))

    itemsizes = [e.dtype.itemsize, g.dtype.itemsize, v.dtype.itemsize]
    align = max(8, max(32 // s for s in itemsizes))       # sublane alignment for td
    slab_bytes = C * HW * max(e.dtype.itemsize, g.dtype.itemsize)
    td, d_pad = _pick_d_tile(D, slab_bytes, block_budget_bytes, align)
    n_d = d_pad // td
    if d_pad != D:
        pad = ((0, 0), (0, 0), (0, d_pad - D), (0, 0))
        e, g, v = jnp.pad(e, pad), jnp.pad(g, pad), jnp.pad(v, pad)
    has_halo = n_d > 1

    # Wrap mask for the W-gradient in the flattened HW dim (0 where w == W-1).
    wmask = jnp.asarray((np.arange(HW) % W != (W - 1)).astype(np.float32).reshape(1, HW))

    in_specs = [
        pl.BlockSpec((1, C, td, HW), lambda b, j: (b, 0, j, 0)),   # emb_e
        pl.BlockSpec((1, C, td, HW), lambda b, j: (b, 0, j, 0)),   # emb_g
        pl.BlockSpec((1, 1, td, HW), lambda b, j: (b, 0, j, 0)),   # vis_g
        pl.BlockSpec((1, HW), lambda b, j: (0, 0)),                # wmask (tiny const)
    ]
    inputs = [e, g, v, wmask]
    if has_halo:
        # "next slab" halo of emb_g for the cross-tile D-gradient; keeps every grid
        # step independent so both axes stay 'parallel' (megacore over D when B == 1).
        hpt = td // align
        n_hb = d_pad // align
        in_specs.append(pl.BlockSpec(
            (1, C, align, HW),
            lambda b, j: (b, 0, jnp.minimum((j + 1) * hpt, n_hb - 1), 0)))
        inputs.append(g)

    kernel = _make_volume_kernel(td, W, HW, D, has_halo)

    # VMEM budget: double-buffered input blocks + output tiles + headroom for the
    # in-kernel f32 temporaries; never request the full physical VMEM.
    in_block_bytes = (C * td * HW * (e.dtype.itemsize + g.dtype.itemsize)
                      + td * HW * v.dtype.itemsize + HW * 4
                      + (C * align * HW * g.dtype.itemsize if has_halo else 0))
    work_bytes = C * td * HW * 4
    need = 2 * (in_block_bytes + 8 * 128 * 4) + 8 * work_bytes + (4 << 20)
    vmem_limit = int(min(0.85 * cap, max(32 << 20, need)))

    out = pl.pallas_call(
        kernel,
        out_shape=jax.ShapeDtypeStruct((B, n_d, 8, 128), jnp.float32),
        grid_spec=pltpu.PrefetchScalarGridSpec(
            num_scalar_prefetch=0,
            grid=(B, n_d),
            in_specs=in_specs,
            out_specs=pl.BlockSpec((1, 1, 8, 128), lambda b, j: (b, j, 0, 0)),
        ),
        compiler_params=pltpu.CompilerParams(
            dimension_semantics=("parallel", "parallel"),
            vmem_limit_bytes=vmem_limit,
        ),
    )(*inputs)

    sums = jnp.sum(out[:, :, :4, 0], axis=(0, 1))   # reduce per-(batch, d-tile) partials
    return sums[0], sums[1], sums[2], sums[3]


def _volume_sums_ref(emb_e, emb_g, vis_g):
    """Pure-JAX reference for the four volume sums (self-check only)."""
    e = emb_e.astype(jnp.float32)
    g = emb_g.astype(jnp.float32)
    vis = vis_g.astype(jnp.float32)
    s_l2 = jnp.sum(jnp.sum((e - g) ** 2, axis=1, keepdims=True) * vis)
    s_vis = jnp.sum(vis)
    valid = 1.0 - jnp.all(g == 0.0, axis=1, keepdims=True).astype(jnp.float32)
    s_vg = jnp.sum(valid)
    dz = jnp.sum(jnp.abs(g[:, :, 1:] - g[:, :, :-1]), axis=1, keepdims=True)
    dy = jnp.sum(jnp.abs(g[:, :, :, 1:] - g[:, :, :, :-1]), axis=1, keepdims=True)
    dx = jnp.sum(jnp.abs(g[:, :, :, :, 1:] - g[:, :, :, :, :-1]), axis=1, keepdims=True)
    s_sm = (jnp.sum(dz * valid[:, :, :-1])
            + jnp.sum(dy * valid[:, :, :, :-1])
            + jnp.sum(dx * valid[:, :, :, :, :-1]))
    return s_l2, s_vis, s_sm, s_vg


# -----------------------------------------------------------------------------
# Kernel 2: pairwise distances + DistanceWeightedSampling probabilities (fused)
# -----------------------------------------------------------------------------
def _sampler_kernel(x_ref, dist_ref, probs_ref):
    x = x_ref[...]                                          # (n, c) f32
    n = x.shape[0]
    dfeat = float(x.shape[1])

    # gram = x @ x.T on the MXU (contract the channel dim of both operands).
    gram = lax.dot_general(x, x, dimension_numbers=(((1,), (1,)), ((), ())),
                           preferred_element_type=jnp.float32)      # (n, n)
    r = lax.broadcasted_iota(jnp.int32, (n, n), 0)
    c = lax.broadcasted_iota(jnp.int32, (n, n), 1)
    eye = jnp.where(r == c, 1.0, 0.0)

    sq_col = jnp.sum(x * x, axis=1, keepdims=True)          # (n, 1) straight from x
    sq_row = jnp.sum(gram * eye, axis=0, keepdims=True)     # (1, n) lane-aligned diagonal
    d2 = jnp.maximum(sq_col + sq_row - 2.0 * gram, 0.0)
    # +1e-8 matches MarginLoss's sqrt(sum + 1e-8); +eye keeps the (unused) diagonal ~1.
    dist = jnp.sqrt(d2 + 1e-8 + eye)
    dist_ref[...] = dist

    # DistanceWeightedSampling weighting -> per-anchor negative-sampling probabilities.
    dcl = jnp.maximum(dist, CUTOFF)
    log_w = ((2.0 - dfeat) * jnp.log(dcl)
             - ((dfeat - 3.0) / 2.0)
             * jnp.log(jnp.maximum(1.0 - 0.25 * dcl * dcl, 1e-8)))
    w = jnp.exp(log_w - jnp.max(log_w))
    # same group <=> indices differ only in the low bit (batch_k == 2, power of two)
    mask = jnp.where((r ^ c) < BATCH_K, 0.0, 1.0)
    w = w * mask * jnp.where(dcl < NONZERO_LOSS_CUTOFF, 1.0, 0.0)
    w_sum = jnp.sum(w, axis=1, keepdims=True)
    uniform = mask * (1.0 / float(n - BATCH_K))
    probs_ref[...] = jnp.where(w_sum > 0.0, w / jnp.maximum(w_sum, 1e-30), uniform)


def _sampler_stats(emb_vec):
    n, c = emb_vec.shape
    return pl.pallas_call(
        _sampler_kernel,
        out_shape=(jax.ShapeDtypeStruct((n, n), jnp.float32),
                   jax.ShapeDtypeStruct((n, n), jnp.float32)),
        grid=(1,),
        in_specs=[pl.BlockSpec((n, c), lambda i: (0, 0))],
        out_specs=(pl.BlockSpec((n, n), lambda i: (0, 0)),
                   pl.BlockSpec((n, n), lambda i: (0, 0))),
    )(emb_vec)


# -----------------------------------------------------------------------------
# Forward pass (EmbNet3D.forward)
# -----------------------------------------------------------------------------
def embnet3d_forward(emb_e, emb_g, vis_g, key):
    # emb_e, emb_g: (B, C, D, H, W); vis_g: (B, 1, D, H, W)  -- PyTorch NCDHW layout,
    # consumed directly by the Pallas kernels (no wrapper transposes, no up-casts).
    B, C, D, H, W = emb_e.shape
    assert EMB_3D_NUM_SAMPLES < B * D * H * W

    # ---- Pallas volume kernel: masked L2 + smoothness sums ----
    s_l2, s_vis, s_sm, s_vg = _volume_sums(emb_e, emb_g, vis_g)
    l2_loss = s_l2 / (EPS + s_vis)            # reduce_masked_mean(sql2, vis_g)
    emb_smooth_loss = s_sm / (EPS + s_vg)     # reduce_masked_mean(smooth_loss, valid_g)

    # ---- margin-loss path: gather the sampled voxels directly from NCDHW ----
    DHW = D * H * W
    n_samp = EMB_3D_NUM_SAMPLES * B
    n2 = n_samp * BATCH_K

    k_perm, k_neg = jax.random.split(key)
    # torch.randperm(N)[:n] equivalent: top-k of iid uniform keys (a uniform random
    # ordered subset) -- avoids the full O(N log N) sort jax.random.permutation uses.
    _, perm = lax.top_k(jax.random.uniform(k_perm, (B * DHW,)), n_samp)
    b_idx = perm // DHW
    s_idx = perm % DHW
    e_s = emb_e.reshape(B, C, DHW)[b_idx, :, s_idx]                       # (n_samp, C)
    g_s = lax.stop_gradient(emb_g).reshape(B, C, DHW)[b_idx, :, s_idx]    # .detach()
    emb_vec = jnp.stack([e_s, g_s], axis=1).reshape(n2, C).astype(jnp.float32)

    # Fused Pallas kernel: pairwise distances + negative-sampling probabilities.
    dist, probs = _sampler_stats(emb_vec)

    # np.random.choice(p=row) -> jax.random.categorical per row (1 negative/anchor)
    neg_idx = jax.random.categorical(k_neg, jnp.log(probs + 1e-30), axis=-1)
    a_idx = jnp.arange(n2)
    p_idx = a_idx ^ 1                         # batch_k==2: positive is the paired sample

    d_ap = dist[a_idx, p_idx]
    d_an = dist[a_idx, neg_idx]
    pos_loss = jnp.maximum(d_ap - BETA + MARGIN, 0.0)
    neg_loss = jnp.maximum(BETA - d_an + MARGIN, 0.0)
    pair_cnt = jnp.sum(jnp.logical_or(pos_loss > 0.0, neg_loss > 0.0).astype(jnp.float32))
    margin_loss = jnp.sum(pos_loss + neg_loss) / jnp.maximum(pair_cnt, 1.0)

    # TODO(synk): summ_writer.summ_oned / summ_occ / summ_feats(pca=True) are
    # visualization-only and do not affect the returned loss; not implemented.

    total_loss = (EMB_3D_ML_COEFF * margin_loss
                  + EMB_3D_L2_COEFF * l2_loss
                  + EMB_3D_SMOOTH_COEFF * emb_smooth_loss)
    return total_loss


if __name__ == "__main__":
    key = jax.random.PRNGKey(0)
    k1, k2, k3, k4 = jax.random.split(key, 4)
    B, C, D, H, W = 2, 8, 12, 8, 8
    emb_e = 0.5 * jax.random.normal(k1, (B, C, D, H, W), jnp.float32)
    emb_g = 0.5 * jax.random.normal(k2, (B, C, D, H, W), jnp.float32)
    # zero out a few voxels of emb_g so the valid masks are exercised
    zero_mask = (jax.random.uniform(k3, (B, 1, D, H, W)) > 0.1).astype(jnp.float32)
    emb_g = emb_g * zero_mask
    vis_g = (jax.random.uniform(k4, (B, 1, D, H, W)) > 0.3).astype(jnp.float32)

    # Self-check of the volume kernel vs. a pure-JAX reference on:
    #   (a) the default single-tile path,
    #   (b) a forced tiny block budget (exercises D tiling + zero-pad + next-slab halo),
    #   (c) bf16 inputs (exercises the native-dtype in-kernel cast path).
    ref = _volume_sums_ref(emb_e, emb_g, vis_g)
    for got in (_volume_sums(emb_e, emb_g, vis_g),
                _volume_sums(emb_e, emb_g, vis_g, block_budget_bytes=16 * 1024)):
        for a, b in zip(got, ref):
            assert jnp.allclose(a, b, rtol=1e-3, atol=1e-3), (a, b)
    e16, g16 = emb_e.astype(jnp.bfloat16), emb_g.astype(jnp.bfloat16)
    ref16 = _volume_sums_ref(e16, g16, vis_g)
    got16 = _volume_sums(e16, g16, vis_g)
    for a, b in zip(got16, ref16):
        assert jnp.allclose(a, b, rtol=1e-2, atol=1e-2), (a, b)

    loss = jax.jit(embnet3d_forward)(emb_e, emb_g, vis_g, jax.random.PRNGKey(0))
    jax.block_until_ready(loss)
    assert loss.shape == () and jnp.isfinite(loss)
    print("KERNEL_OK")
</pallas_src>

<mosaic_0001>
module attributes {stable_mosaic.version = 11 : i64} {
  func.func @kernel(%arg0: i32, %arg1: i32, %arg2: memref<1x8x12x64xf32, #tpu.memory_space<vmem>>, %arg3: memref<1x8x12x64xf32, #tpu.memory_space<vmem>>, %arg4: memref<1x1x12x64xf32, #tpu.memory_space<vmem>>, %arg5: memref<1x64xf32, #tpu.memory_space<vmem>>, %arg6: memref<1x1x8x128xf32, #tpu.memory_space<vmem>>) attributes {dimension_semantics = [#tpu.dimension_semantics<parallel>, #tpu.dimension_semantics<parallel>], iteration_bounds = array<i64: 2, 1>, scalar_prefetch = 0 : i64, scratch_operands = 0 : i64, tpu.core_type = #tpu.core_type<tc>, window_params = [{transform_indices = @transform_0, window_bounds = array<i64: 1, 8, 12, 64>}, {transform_indices = @transform_1, window_bounds = array<i64: 1, 8, 12, 64>}, {transform_indices = @transform_2, window_bounds = array<i64: 1, 1, 12, 64>}, {pipeline_mode = #tpu.pipeline_mode<synchronous>, transform_indices = @transform_3, window_bounds = array<i64: 1, 64>}, {transform_indices = @transform_4, window_bounds = array<i64: 1, 1, 8, 128>}]} {
    %c0 = arith.constant 0 : index
    %c0_0 = arith.constant 0 : index
    %c0_1 = arith.constant 0 : index
    %c0_2 = arith.constant 0 : index
    %0 = vector.load %arg2[%c0, %c0_0, %c0_1, %c0_2] : memref<1x8x12x64xf32, #tpu.memory_space<vmem>>, vector<1x8x12x64xf32>
    %1 = vector.shape_cast %0 : vector<1x8x12x64xf32> to vector<8x12x64xf32>
    %c0_3 = arith.constant 0 : index
    %c0_4 = arith.constant 0 : index
    %c0_5 = arith.constant 0 : index
    %c0_6 = arith.constant 0 : index
    %2 = vector.load %arg3[%c0_3, %c0_4, %c0_5, %c0_6] : memref<1x8x12x64xf32, #tpu.memory_space<vmem>>, vector<1x8x12x64xf32>
    %3 = vector.shape_cast %2 : vector<1x8x12x64xf32> to vector<8x12x64xf32>
    %c0_7 = arith.constant 0 : index
    %c0_8 = arith.constant 0 : index
    %c0_9 = arith.constant 0 : index
    %c0_10 = arith.constant 0 : index
    %4 = vector.load %arg4[%c0_7, %c0_8, %c0_9, %c0_10] : memref<1x1x12x64xf32, #tpu.memory_space<vmem>>, vector<1x1x12x64xf32>
    %5 = vector.shape_cast %4 : vector<1x1x12x64xf32> to vector<12x64xf32>
    %c0_11 = arith.constant 0 : index
    %c0_12 = arith.constant 0 : index
    %6 = vector.load %arg5[%c0_11, %c0_12] : memref<1x64xf32, #tpu.memory_space<vmem>>, vector<1x64xf32>
    %7 = arith.subf %1, %3 : vector<8x12x64xf32>
    %8 = arith.mulf %7, %7 : vector<8x12x64xf32>
    %cst = arith.constant dense<0.000000e+00> : vector<12x64xf32>
    %9 = vector.multi_reduction <add>, %8, %cst [0] : vector<8x12x64xf32> to vector<12x64xf32>
    %10 = arith.mulf %9, %5 : vector<12x64xf32>
    %11 = vector.shape_cast %10 : vector<12x64xf32> to vector<1x12x64xf32>
    %cst_13 = arith.constant dense<0.000000e+00> : vector<1xf32>
    %12 = vector.multi_reduction <add>, %11, %cst_13 [1, 2] : vector<1x12x64xf32> to vector<1xf32>
    %13 = vector.shape_cast %12 : vector<1xf32> to vector<1x1x1xf32>
    %14 = vector.extract %13[0, 0, 0] : f32 from vector<1x1x1xf32>
    %15 = vector.shape_cast %5 : vector<12x64xf32> to vector<1x12x64xf32>
    %cst_14 = arith.constant dense<0.000000e+00> : vector<1xf32>
    %16 = vector.multi_reduction <add>, %15, %cst_14 [1, 2] : vector<1x12x64xf32> to vector<1xf32>
    %17 = vector.shape_cast %16 : vector<1xf32> to vector<1x1x1xf32>
    %18 = vector.extract %17[0, 0, 0] : f32 from vector<1x1x1xf32>
    %cst_15 = arith.constant 0.000000e+00 : f32
    %19 = vector.broadcast %cst_15 : f32 to vector<8x12x64xf32>
    %20 = arith.cmpf one, %3, %19 : vector<8x12x64xf32>
    %cst_16 = arith.constant 1.000000e+00 : f32
    %cst_17 = arith.constant 0.000000e+00 : f32
    %21 = vector.broadcast %cst_16 : f32 to vector<8x12x64xf32>
    %22 = vector.broadcast %cst_17 : f32 to vector<8x12x64xf32>
    %23 = arith.select %20, %21, %22 : vector<8x12x64xi1>, vector<8x12x64xf32>
    %cst_18 = arith.constant dense<0xFF800000> : vector<12x64xf32>
    %24 = vector.multi_reduction <maximumf>, %23, %cst_18 [0] : vector<8x12x64xf32> to vector<12x64xf32>
    %25 = vector.shape_cast %24 : vector<12x64xf32> to vector<1x12x64xf32>
    %cst_19 = arith.constant dense<0.000000e+00> : vector<1xf32>
    %26 = vector.multi_reduction <add>, %25, %cst_19 [1, 2] : vector<1x12x64xf32> to vector<1xf32>
    %27 = vector.shape_cast %26 : vector<1xf32> to vector<1x1x1xf32>
    %28 = vector.extract %27[0, 0, 0] : f32 from vector<1x1x1xf32>
    %29 = vector.extract_strided_slice %3 {offsets = [0, 0, 1], sizes = [8, 12, 63], strides = [1, 1, 1]} : vector<8x12x64xf32> to vector<8x12x63xf32>
    %30 = vector.extract_strided_slice %3 {offsets = [0, 0, 0], sizes = [8, 12, 63], strides = [1, 1, 1]} : vector<8x12x64xf32> to vector<8x12x63xf32>
    %31 = arith.subf %29, %30 : vector<8x12x63xf32>
    %32 = math.absf %31 : vector<8x12x63xf32>
    %cst_20 = arith.constant dense<0.000000e+00> : vector<12x63xf32>
    %33 = vector.multi_reduction <add>, %32, %cst_20 [0] : vector<8x12x63xf32> to vector<12x63xf32>
    %34 = vector.extract_strided_slice %24 {offsets = [0, 0], sizes = [12, 63], strides = [1, 1]} : vector<12x64xf32> to vector<12x63xf32>
    %35 = vector.extract_strided_slice %6 {offsets = [0, 0], sizes = [1, 63], strides = [1, 1]} : vector<1x64xf32> to vector<1x63xf32>
    %36 = vector.broadcast %35 : vector<1x63xf32> to vector<12x63xf32>
    %37 = arith.mulf %34, %36 : vector<12x63xf32>
    %38 = arith.mulf %33, %37 : vector<12x63xf32>
    %39 = vector.shape_cast %38 : vector<12x63xf32> to vector<1x12x63xf32>
    %cst_21 = arith.constant dense<0.000000e+00> : vector<1xf32>
    %40 = vector.multi_reduction <add>, %39, %cst_21 [1, 2] : vector<1x12x63xf32> to vector<1xf32>
    %41 = vector.shape_cast %40 : vector<1xf32> to vector<1x1x1xf32>
    %42 = vector.extract %41[0, 0, 0] : f32 from vector<1x1x1xf32>
    %cst_22 = arith.constant 0.000000e+00 : f32
    %43 = arith.addf %cst_22, %42 : f32
    %44 = vector.extract_strided_slice %3 {offsets = [0, 0, 8], sizes = [8, 12, 56], strides = [1, 1, 1]} : vector<8x12x64xf32> to vector<8x12x56xf32>
    %45 = vector.extract_strided_slice %3 {offsets = [0, 0, 0], sizes = [8, 12, 56], strides = [1, 1, 1]} : vector<8x12x64xf32> to vector<8x12x56xf32>
    %46 = arith.subf %44, %45 : vector<8x12x56xf32>
    %47 = math.absf %46 : vector<8x12x56xf32>
    %cst_23 = arith.constant dense<0.000000e+00> : vector<12x56xf32>
    %48 = vector.multi_reduction <add>, %47, %cst_23 [0] : vector<8x12x56xf32> to vector<12x56xf32>
    %49 = vector.extract_strided_slice %24 {offsets = [0, 0], sizes = [12, 56], strides = [1, 1]} : vector<12x64xf32> to vector<12x56xf32>
    %50 = arith.mulf %48, %49 : vector<12x56xf32>
    %51 = vector.shape_cast %50 : vector<12x56xf32> to vector<1x12x56xf32>
    %cst_24 = arith.constant dense<0.000000e+00> : vector<1xf32>
    %52 = vector.multi_reduction <add>, %51, %cst_24 [1, 2] : vector<1x12x56xf32> to vector<1xf32>
    %53 = vector.shape_cast %52 : vector<1xf32> to vector<1x1x1xf32>
    %54 = vector.extract %53[0, 0, 0] : f32 from vector<1x1x1xf32>
    %55 = arith.addf %43, %54 : f32
    %56 = vector.extract_strided_slice %3 {offsets = [0, 1, 0], sizes = [8, 11, 64], strides = [1, 1, 1]} : vector<8x12x64xf32> to vector<8x11x64xf32>
    %57 = vector.extract_strided_slice %3 {offsets = [0, 0, 0], sizes = [8, 11, 64], strides = [1, 1, 1]} : vector<8x12x64xf32> to vector<8x11x64xf32>
    %58 = arith.subf %56, %57 : vector<8x11x64xf32>
    %59 = math.absf %58 : vector<8x11x64xf32>
    %cst_25 = arith.constant dense<0.000000e+00> : vector<11x64xf32>
    %60 = vector.multi_reduction <add>, %59, %cst_25 [0] : vector<8x11x64xf32> to vector<11x64xf32>
    %61 = vector.extract_strided_slice %24 {offsets = [0, 0], sizes = [11, 64], strides = [1, 1]} : vector<12x64xf32> to vector<11x64xf32>
    %62 = arith.mulf %60, %61 : vector<11x64xf32>
    %63 = vector.shape_cast %62 : vector<11x64xf32> to vector<1x11x64xf32>
    %cst_26 = arith.constant dense<0.000000e+00> : vector<1xf32>
    %64 = vector.multi_reduction <add>, %63, %cst_26 [1, 2] : vector<1x11x64xf32> to vector<1xf32>
    %65 = vector.shape_cast %64 : vector<1xf32> to vector<1x1x1xf32>
    %66 = vector.extract %65[0, 0, 0] : f32 from vector<1x1x1xf32>
    %67 = arith.addf %55, %66 : f32
    %68 = tpu.iota {dimensions = array<i32: 0>} : vector<8x128xi32>
    %c0_i32 = arith.constant 0 : i32
    %69 = vector.broadcast %c0_i32 : i32 to vector<8x128xi32>
    %70 = arith.cmpi eq, %68, %69 : vector<8x128xi32>
    %cst_27 = arith.constant 0.000000e+00 : f32
    %71 = vector.broadcast %14 : f32 to vector<8x128xf32>
    %72 = vector.broadcast %cst_27 : f32 to vector<8x128xf32>
    %73 = arith.select %70, %71, %72 : vector<8x128xi1>, vector<8x128xf32>
    %c1_i32 = arith.constant 1 : i32
    %74 = vector.broadcast %c1_i32 : i32 to vector<8x128xi32>
    %75 = arith.cmpi eq, %68, %74 : vector<8x128xi32>
    %cst_28 = arith.constant 0.000000e+00 : f32
    %76 = vector.broadcast %18 : f32 to vector<8x128xf32>
    %77 = vector.broadcast %cst_28 : f32 to vector<8x128xf32>
    %78 = arith.select %75, %76, %77 : vector<8x128xi1>, vector<8x128xf32>
    %79 = arith.addf %73, %78 : vector<8x128xf32>
    %c2_i32 = arith.constant 2 : i32
    %80 = vector.broadcast %c2_i32 : i32 to vector<8x128xi32>
    %81 = arith.cmpi eq, %68, %80 : vector<8x128xi32>
    %cst_29 = arith.constant 0.000000e+00 : f32
    %82 = vector.broadcast %67 : f32 to vector<8x128xf32>
    %83 = vector.broadcast %cst_29 : f32 to vector<8x128xf32>
    %84 = arith.select %81, %82, %83 : vector<8x128xi1>, vector<8x128xf32>
    %85 = arith.addf %79, %84 : vector<8x128xf32>
    %c3_i32 = arith.constant 3 : i32
    %86 = vector.broadcast %c3_i32 : i32 to vector<8x128xi32>
    %87 = arith.cmpi eq, %68, %86 : vector<8x128xi32>
    %cst_30 = arith.constant 0.000000e+00 : f32
    %88 = vector.broadcast %28 : f32 to vector<8x128xf32>
    %89 = vector.broadcast %cst_30 : f32 to vector<8x128xf32>
    %90 = arith.select %87, %88, %89 : vector<8x128xi1>, vector<8x128xf32>
    %91 = arith.addf %85, %90 : vector<8x128xf32>
    %c0_31 = arith.constant 0 : index
    %c0_32 = arith.constant 0 : index
    %c0_33 = arith.constant 0 : index
    %c0_34 = arith.constant 0 : index
    %92 = vector.load %arg6[%c0_31, %c0_32, %c0_33, %c0_34] : memref<1x1x8x128xf32, #tpu.memory_space<vmem>>, vector<1x1x8x128xf32>
    %93 = vector.shape_cast %92 : vector<1x1x8x128xf32> to vector<8x128xf32>
    %94 = vector.shape_cast %91 : vector<8x128xf32> to vector<1x1x8x128xf32>
    tpu.vector_store %arg6[%c0_31, %c0_32, %c0_33, %c0_34], %94 {strides = array<i32>} : memref<1x1x8x128xf32, #tpu.memory_space<vmem>>, vector<1x1x8x128xf32>,
    return
  }
  func.func @transform_0(%arg0: i32, %arg1: i32) -> (i32, i32, i32, i32) {
    %c0_i32 = arith.constant 0 : i32
    %c0_i32_0 = arith.constant 0 : i32
    %c0_i32_1 = arith.constant 0 : i32
    return %arg0, %c0_i32, %arg1, %c0_i32_0 : i32, i32, i32, i32
  }
  func.func @transform_1(%arg0: i32, %arg1: i32) -> (i32, i32, i32, i32) {
    %c0_i32 = arith.constant 0 : i32
    %c0_i32_0 = arith.constant 0 : i32
    %c0_i32_1 = arith.constant 0 : i32
    return %arg0, %c0_i32, %arg1, %c0_i32_0 : i32, i32, i32, i32
  }
  func.func @transform_2(%arg0: i32, %arg1: i32) -> (i32, i32, i32, i32) {
    %c0_i32 = arith.constant 0 : i32
    %c0_i32_0 = arith.constant 0 : i32
    %c0_i32_1 = arith.constant 0 : i32
    return %arg0, %c0_i32, %arg1, %c0_i32_0 : i32, i32, i32, i32
  }
  func.func @transform_3(%arg0: i32, %arg1: i32) -> (i32, i32) {
    %c0_i32 = arith.constant 0 : i32
    %c0_i32_0 = arith.constant 0 : i32
    %c0_i32_1 = arith.constant 0 : i32
    return %c0_i32, %c0_i32_0 : i32, i32
  }
  func.func @transform_4(%arg0: i32, %arg1: i32) -> (i32, i32, i32, i32) {
    %c0_i32 = arith.constant 0 : i32
    %c0_i32_0 = arith.constant 0 : i32
    %c0_i32_1 = arith.constant 0 : i32
    return %arg0, %arg1, %c0_i32, %c0_i32_0 : i32, i32, i32, i32
  }
}

</mosaic_0001>

<bundles_post_ra>
// kernel: tpu_custom_call.1
= control target key start
LH: loop header
LB: loop body
LE: loop exit
PB: predicated region body
PF: predicated region fallthrough
CT: control target
= control target key end

     0   :  { %9 = vsyncpa [#allocation3], 0  ;;  %s1855_s0 = inlined_call_operand.vmem [shape: f32[2,8,12,64], index: 0, kind: input, shape index: {}]   ;;  %s1856_s1 = inlined_call_operand.vmem [shape: f32[2,8,12,64], index: 1, kind: input, shape index: {}]   ;;  %s1857_s2 = inlined_call_operand.vmem [shape: f32[2,1,12,64], index: 2, kind: input, shape index: {}]   ;;  %s1858_s3 = inlined_call_operand.vmem [shape: f32[1,64], index: 3, kind: input, shape index: {}]   ;;  %s1859_s4 = inlined_call_operand.hbm [shape: f32[2,1,8,128], index: 4, kind: output, shape index: {}]  }
   0x1   :  { %11 = vsyncpa [#allocation3 + $0x1], 0  ;;  %s1295_s15 = smov 0   ;;  %s1297_s16 = smov 0  }
   0x2   :  { %s1299_s17 = smov 0   ;;  %s1301_s18 = smov 0  }
   0x3   :  { %s1303_s19 = smov 0   ;;  %s1305_s20 = smov 0  }
   0x4 LB: > { %s1087_s21 = sadd.s32 4294967295, %s1262_s20   ;;  %s1088_s22 = sadd.s32 4294967294, %s1262_s20   ;;  %s1262_s20 = sphi %s1305_s20, %s17_s20   ;;  %s1258_s19 = sphi %s1303_s19, %s1866_s19   ;;  %s1254_s18 = sphi %s1301_s18, %s1865_s18   ;;  %s1250_s17 = sphi %s1299_s17, %s1864_s17   ;;  %s1246_s16 = sphi %s1297_s16, %s1863_s16   ;;  %s1242_s15 = sphi %s1295_s15, %s1862_s15  }
   0x5   : > { %s29_s23 = sadd.s32 1, %s1258_s19  ;;  %s143_s24 = sadd.s32 1, %s1250_s17 }
   0x6   : > { %p31_p0 = scmp.ge.s32.totalorder %s29_s23, 2  ;;  %p153_p1 = scmp.ne.s32.totalorder %s1250_s17, %s1246_s16 }
   0x7   : > { %p154_p2 = scmp.eq.s32.totalorder %s1087_s21, 1  ;;  %p159_p3 = scmp.ne.s32.totalorder %s1246_s16, %s1242_s15 }
   0x8   : > { %s1868_s23 = smov (%p31_p0, %s29_s23), 0  ;;  %p160_p5 = scmp.eq.s32.totalorder %s1088_s22, 1 }
   0x9   : > { %p1335_p4 = por %p154_p2, %p153_p1  ;;  %s138_s26 = ssub.s32 %s1258_s19, %s1868_s23 }
   0xa   : > { %p1091_p6 = scmp.ge.s32.totalorder %s1262_s20, 1  ;;  %p141_p7 = scmp.eq.s32.totalorder %s138_s26, 0 }
   0xb   : > { %p1342_p8 = por %p160_p5, %p159_p3  ;;  %p220_p9 = scmp.lt.s32.totalorder %s1262_s20, 3 }
   0xc   : > { %s1348_s28 = scalar_select %p141_p7, %s1250_s17, %s143_s24  }
   0xd   : > { %p221_p10 = pnand %p1091_p6, %p220_p9 }
   0xe   : > { %p269_p11 = scmp.lt.s32.totalorder (!%p221_p10), %s1254_s18, 1  ;;  %s1264_s8 = smov (!%p221_p10), 1   ;;  %vm381_vm8 = vcmask (!%p221_p10), 519168   ;;  %vm365_vm10 = vcmask (!%p221_p10), 523264   ;;  %v1266_v12 = vmov (!%p221_p10), 0.0  }
   0xf   : > { %224 = sbr.rel (%p221_p10) target bundleno = 560 (0x230), region = 36  ;;  %s1265_s9 = smov (!%p221_p10), 8   ;;  %v1099_v63 = vld [vmem:[%s1858_s3] ss:$0 sm:$0xff] (!%p221_p10) }
  0x10   : > { %s1267_s21 = smov (!%p221_p10), 127   ;;  %s1268_s22 = smov (!%p221_p10), 120  }
  0x16   : > { %s1352_s29 = scalar_select %p269_p11, %s1254_s18, 1 }
  0x18   : > { %s1104_s30 = sshll.u32 %s1352_s29, 7  ;;  %s1106_s24 = sshll.u32 %s1352_s29, 4 }
  0x19   : > { %s1360_s7 = scalar_lea.vmem %s1856_s1, %s1104_s30  ;;  %s1563_s14 = scalar_lea.vmem %s1855_s0, %s1104_s30 }
  0x1a   : > { %v1363_v0 = vld [vmem:[%s1360_s7 + $0x10] sm:$0xff]  ;;  %v1366_v1 = vld [vmem:[%s1360_s7] sm:$0xff]  ;;  %v1373_v2 = vld [vmem:[%s1360_s7 + $0x18] sm:$0xf]  ;;  %s296_s5 = scalar_lea.vmem %s1857_s2, %s1106_s24 }
  0x1b   : > { %517 = vrot.lane.b32.xlu1 %v1363_v0, %s1264_s8  ;;  %513 = vrot.lane.b32.xlu0 %v1366_v1, %s1264_s8  ;;  %v1376_v3 = vld [vmem:[%s1360_s7 + $0x8] sm:$0xf]  ;;  %v1394_v5 = vld [vmem:[%s1360_s7 + $0x20] sm:$0xff]  ;;  %vm426_vm1 = vcmp.ne.f32.partialorder %v1373_v2, 0.0  ;;  %vm423_vm4 = vcmp.ne.f32.partialorder %v1366_v1, 0.0  ;;  %vm425_vm5 = vcmp.ne.f32.partialorder %v1363_v0, 0.0 }
  0x1c   : > { %v1391_v4 = vld [vmem:[%s1360_s7 + $0x28] sm:$0xf]  ;;  %v1405_v6 = vld [vmem:[%s1360_s7 + $0x38] sm:$0xf]  ;;  %v1408_v7 = vld [vmem:[%s1360_s7 + $0x30] sm:$0xff]  ;;  %vm424_vm0 = vcmp.ne.f32.partialorder %v1376_v3, 0.0 }
  0x1d   : > { %v1419_v8 = vld [vmem:[%s1360_s7 + $0x48] sm:$0xf]  ;;  %v1422_v9 = vld [vmem:[%s1360_s7 + $0x40] sm:$0xff]  ;;  %vm428_vm2 = vcmp.ne.f32.partialorder %v1391_v4, 0.0  ;;  %vm430_vm3 = vcmp.ne.f32.partialorder %v1405_v6, 0.0  ;;  %vm427_vm6 = vcmp.ne.f32.partialorder %v1394_v5, 0.0 }
  0x1e   : > { %vm429_vm7 = vcmp.ne.f32.partialorder %v1408_v7, 0.0  ;;  %v1441_v10 = vld [vmem:[%s1360_s7 + $0x58] sm:$0xf]  ;;  %vm432_vm9 = vcmp.ne.f32.partialorder %v1419_v8, 0.0  ;;  %v1445_v11 = vld [vmem:[%s1360_s7 + $0x50] sm:$0xff]  ;;  %v440_v13 = vsel %vm424_vm0, 1.0, %v1266_v12 }
  0x1f   : > { %519 = vrot.lane.b32.xlu1 %v1373_v2, %s1264_s8  ;;  %515 = vrot.lane.b32.xlu0 %v1376_v3, %s1264_s8  ;;  %v442_v14 = vsel %vm426_vm1, 1.0, %v1266_v12  ;;  %v444_v15 = vsel %vm428_vm2, 1.0, %v1266_v12  ;;  %v446_v16 = vsel %vm430_vm3, 1.0, %v1266_v12  ;;  %v439_v17 = vsel %vm423_vm4, 1.0, %v1266_v12  ;;  %v1464_v21 = vld [vmem:[%s1360_s7 + $0x78] sm:$0xf] }
  0x20   : > { %v441_v18 = vsel %vm425_vm5, 1.0, %v1266_v12  ;;  %v443_v19 = vsel %vm427_vm6, 1.0, %v1266_v12  ;;  %v445_v20 = vsel %vm429_vm7, 1.0, %v1266_v12  ;;  %vm434_vm11 = vcmp.ne.f32.partialorder %v1441_v10, 0.0  ;;  %v1474_v23 = vld [vmem:[%s1360_s7 + $0x70] sm:$0xff]  ;;  %v1488_v33 = vld [vmem:[%s1360_s7 + $0x60] sm:$0xff] }
  0x21   : > { %v448_v22 = vsel %vm432_vm9, 1.0, %v1266_v12  ;;  %vm431_vm12 = vcmp.ne.f32.partialorder %v1422_v9, 0.0  ;;  %vm433_vm13 = vcmp.ne.f32.partialorder %v1445_v11, 0.0  ;;  %v470_v24 = vsel %vm381_vm8, %v440_v13, -inf  ;;  %v1481_v28 = vld [vmem:[%s1360_s7 + $0x68] sm:$0xf] }
  0x22   : > { %v471_v25 = vsel %vm381_vm8, %v442_v14, -inf  ;;  %v472_v26 = vsel %vm381_vm8, %v444_v15, -inf  ;;  %v474_v27 = vsel %vm381_vm8, %v446_v16, -inf  ;;  %v455_v29 = vsel %vm365_vm10, %v439_v17, -inf  ;;  %s265_s7 = sand.u32 1, %s1246_s16  }
  0x23   : > { %668 = vrot.lane.b32.xlu1 %v1376_v3, %s1265_s9  ;;  %666 = vrot.lane.b32.xlu0 %v1366_v1, %s1265_s9  ;;  %v456_v30 = vsel %vm365_vm10, %v441_v18, -inf  ;;  %v457_v31 = vsel %vm365_vm10, %v443_v19, -inf  ;;  %v459_v32 = vsel %vm365_vm10, %v445_v20, -inf  ;;  %vm436_vm14 = vcmp.ne.f32.partialorder %v1481_v28, 0.0  ;;  %s1092_s11 = sshll.u32 %s265_s7, 3 }
  0x24   : > { %v450_v34 = vsel %vm434_vm11, 1.0, %v1266_v12  ;;  %v447_v35 = vsel %vm431_vm12, 1.0, %v1266_v12  ;;  %v449_v36 = vsel %vm433_vm13, 1.0, %v1266_v12  ;;  %vm438_vm15 = vcmp.ne.f32.partialorder %v1464_v21, 0.0 }
  0x25   : > { %v473_v37 = vmax.f32 %v470_v24, %v472_v26  ;;  %vm435_vm0 = vcmp.ne.f32.partialorder %v1488_v33, 0.0  ;;  %vm437_vm1 = vcmp.ne.f32.partialorder %v1474_v23, 0.0  ;;  %v475_v38 = vmax.f32 %v471_v25, %v474_v27 }
  0x26   : > { %v476_v39 = vsel %vm381_vm8, %v448_v22, -inf  ;;  %v458_v40 = vmax.f32 %v455_v29, %v457_v31  ;;  %v460_v41 = vmax.f32 %v456_v30, %v459_v32  ;;  %v452_v42 = vsel %vm436_vm14, 1.0, %v1266_v12 }
  0x27   : > { %672 = vrot.lane.b32.xlu1 %v1373_v2, %s1265_s9  ;;  %670 = vrot.lane.b32.xlu0 %v1363_v0, %s1265_s9  ;;  %v478_v43 = vsel %vm381_vm8, %v450_v34, -inf  ;;  %v461_v44 = vsel %vm365_vm10, %v447_v35, -inf  ;;  %v463_v45 = vsel %vm365_vm10, %v449_v36, -inf  ;;  %v454_v46 = vsel %vm438_vm15, 1.0, %v1266_v12  ;;  %v298_v35 = vld [vmem:[%s1563_s14] sm:$0xff] }
  0x28   : > { %v451_v47 = vsel %vm435_vm0, 1.0, %v1266_v12  ;;  %v453_v48 = vsel %vm437_vm1, 1.0, %v1266_v12  ;;  %v477_v49 = vmax.f32 %v473_v37, %v476_v39  ;;  %v479_v50 = vmax.f32 %v475_v38, %v478_v43  ;;  %v299_v36 = vld [vmem:[%s1563_s14 + $0x8] sm:$0xf]  ;;  %v300_v38 = vld [vmem:[%s1563_s14 + $0x10] sm:$0xff]  ;;  %v302_v43 = vld [vmem:[%s1563_s14 + $0x20] sm:$0xff] }
  0x29   : > { %v480_v51 = vsel %vm381_vm8, %v452_v42, -inf  ;;  %v462_v52 = vmax.f32 %v458_v40, %v461_v44  ;;  %v464_v53 = vmax.f32 %v460_v41, %v463_v45  ;;  %v482_v54 = vsel %vm381_vm8, %v454_v46, -inf  ;;  %v301_v39 = vld [vmem:[%s1563_s14 + $0x18] sm:$0xf]  ;;  %v303_v44 = vld [vmem:[%s1563_s14 + $0x28] sm:$0xf] }
  0x2a   : > { %v465_v55 = vsel %vm365_vm10, %v451_v47, -inf  ;;  %v467_v56 = vsel %vm365_vm10, %v453_v48, -inf  ;;  %v481_v57 = vmax.f32 %v477_v49, %v480_v51  ;;  %v483_v58 = vmax.f32 %v479_v50, %v482_v54  ;;  %v304_v45 = vld [vmem:[%s1563_s14 + $0x30] sm:$0xff]  ;;  %v305_v50 = vld [vmem:[%s1563_s14 + $0x38] sm:$0xf] }
  0x2b   : > { %523 = vrot.lane.b32.xlu1 %v1391_v4, %s1264_s8  ;;  %521 = vrot.lane.b32.xlu0 %v1394_v5, %s1264_s8  ;;  %v466_v59 = vmax.f32 %v462_v52, %v465_v55  ;;  %v468_v60 = vmax.f32 %v464_v53, %v467_v56  ;;  %vm593_vm2 = vcmask 523272   ;;  %vm609_vm3 = vcmask 519176  }
  0x2c   : > { %v1524_v61 = vmax.f32 %v481_v57, %v483_v58  ;;  %v333_v46 = vsub.f32 %v298_v35, %v1366_v1  ;;  %v334_v47 = vsub.f32 %v299_v36, %v1376_v3  ;;  %vm762_vm4 = vcmask 519232  }
  0x2d   : > { %v1526_v62 = vmax.f32 %v466_v59, %v468_v60  ;;  %vm746_vm5 = vcmask 523328   ;;  %v335_v53 = vsub.f32 %v300_v38, %v1363_v0  ;;  %v336_v54 = vsub.f32 %v301_v39, %v1373_v2 }
  0x2e   : > { %v632_v12 = vmul.f32 %v1099_v63, %v1524_v61  ;;  %v1592_v56 = vsub.f32 %v302_v43, %v1394_v5  ;;  %v1595_v57 = vsub.f32 %v303_v44, %v1391_v4  ;;  %v1598_v58 = vsub.f32 %v304_v45, %v1408_v7 }
  0x2f   : > { %676 = vrot.lane.b32.xlu1 %v1391_v4, %s1265_s9  ;;  %674 = vrot.lane.b32.xlu0 %v1394_v5, %s1265_s9  ;;  %v631_v13 = vmul.f32 %v1099_v63, %v1526_v62  ;;  %v1179_v14 = vpack.i.bf16 %v1524_v61, %v1526_v62  ;;  %v1615_v35 = vmul.f32 %v335_v53, %v335_v53  ;;  %vm811_vm6 = vcmask 1040384  }
  0x30   : > { %v1617_v36 = vmul.f32 %v336_v54, %v336_v54  ;;  %vm884_vm7 = vcmask 523265   ;;  %vm924_vm9 = vcmask 1046528   ;;  %vm651_vm11 = vcmask 515072  }
  0x31   : > { %vm653_vm12 = vcmask 510976   ;;  %vm931_vm13 = vcmask 518144   ;;  %vm796_vm14 = vcmask 457728  }
  0x33   : > { %527 = vrot.lane.b32.xlu1 %v1405_v6, %s1264_s8  ;;  %525 = vrot.lane.b32.xlu0 %v1408_v7, %s1264_s8 }
  0x37   : > { %680 = vrot.lane.b32.xlu1 %v1405_v6, %s1265_s9  ;;  %678 = vrot.lane.b32.xlu0 %v1408_v7, %s1265_s9 }
  0x3b   : > { %531 = vrot.lane.b32.xlu1 %v1419_v8, %s1264_s8  ;;  %529 = vrot.lane.b32.xlu0 %v1422_v9, %s1264_s8 }
  0x3f   : > { %684 = vrot.lane.b32.xlu1 %v1419_v8, %s1265_s9  ;;  %682 = vrot.lane.b32.xlu0 %v1422_v9, %s1265_s9 }
  0x43   : > { %535 = vrot.lane.b32.xlu1 %v1441_v10, %s1264_s8  ;;  %533 = vrot.lane.b32.xlu0 %v1445_v11, %s1264_s8 }
  0x47   : > { %688 = vrot.lane.b32.xlu1 %v1441_v10, %s1265_s9  ;;  %686 = vrot.lane.b32.xlu0 %v1445_v11, %s1265_s9 }
  0x4b   : > { %539 = vrot.lane.b32.xlu1 %v1481_v28, %s1264_s8  ;;  %537 = vrot.lane.b32.xlu0 %v1488_v33, %s1264_s8 }
  0x4f   : > { %692 = vrot.lane.b32.xlu1 %v1481_v28, %s1265_s9  ;;  %690 = vrot.lane.b32.xlu0 %v1488_v33, %s1265_s9 }
  0x53   : > { %543 = vrot.lane.b32.xlu1 %v1464_v21, %s1264_s8  ;;  %541 = vrot.lane.b32.xlu0 %v1474_v23, %s1264_s8 }
  0x57   : > { %696 = vrot.lane.b32.xlu1 %v1464_v21, %s1265_s9  ;;  %694 = vrot.lane.b32.xlu0 %v1474_v23, %s1265_s9 }
  0x5b   : > { %637 = vrot.lane.b32.xlu1 %v632_v12, %s1264_s8  ;;  %635 = vrot.lane.b32.xlu0 %v631_v13, %s1264_s8  ;;  %v1605_v12 = vsub.f32 %v305_v50, %v1405_v6  ;;  %v1607_v13 = vmul.f32 %v333_v46, %v333_v46 }
  0x5f   : > { %1180 = vrot.lane.b32.xlu0 %v1179_v14, %s1265_s9  ;;  %v1609_v14 = vmul.f32 %v334_v47, %v334_v47 }
  0x8d   : > { %v518_v15 = vpop.permute.xlu1 %517  ;;  %v514_v16 = vpop.permute.xlu0 %513 }
  0x8e   : > { %v563_v37 = vsub.f32 %v1363_v0, %v518_v15  ;;  %v561_v40 = vsub.f32 %v1366_v1, %v514_v16 }
  0x90   : > { %v579_v55 = vand.u32 2147483647, %v563_v37  ;;  %v577_v59 = vand.u32 2147483647, %v561_v40 }
  0x91   : > { %v520_v17 = vpop.permute.xlu1 %519  ;;  %v516_v18 = vpop.permute.xlu0 %515 }
  0x92   : > { %v564_v48 = vsub.f32 %v1373_v2, %v520_v17  ;;  %v562_v49 = vsub.f32 %v1376_v3, %v516_v18  ;;  %v595_v37 = vsel %vm593_vm2, %v579_v55, 0.0  ;;  %v594_v40 = vsel %vm593_vm2, %v577_v59, 0.0 }
  0x93   : > { %v596_v50 = vadd.f32 %v595_v37, %v594_v40 }
  0x94   : > { %v580_v15 = vand.u32 2147483647, %v564_v48  ;;  %v578_v16 = vand.u32 2147483647, %v562_v49 }
  0x95   : > { %v1542_v19 = vpop.permute.xlu1 %668  ;;  %v1544_v20 = vpop.permute.xlu0 %666 }
  0x96   : > { %v715_v17 = vsub.f32 %v1376_v3, %v1542_v19  ;;  %v714_v18 = vsub.f32 %v1366_v1, %v1544_v20 }
  0x98   : > { %v731_v47 = vand.u32 2147483647, %v715_v17  ;;  %v730_v48 = vand.u32 2147483647, %v714_v18 }
  0x99   : > { %v673_v22 = vpop.permute.xlu1 %672  ;;  %v671_v24 = vpop.permute.xlu0 %670 }
  0x9a   : > { %v717_v51 = vsub.f32 %v1373_v2, %v673_v22  ;;  %v716_v52 = vsub.f32 %v1363_v0, %v671_v24  ;;  %v763_v17 = vsel %vm762_vm4, %v731_v47, 0.0  ;;  %v747_v18 = vsel %vm746_vm5, %v730_v48, 0.0 }
  0x9c   : > { %v733_v22 = vand.u32 2147483647, %v717_v51  ;;  %v732_v24 = vand.u32 2147483647, %v716_v52 }
  0x9d   : > { %v1546_v25 = vpop.permute.xlu1 %523  ;;  %v1548_v26 = vpop.permute.xlu0 %521 }
  0x9e   : > { %v566_v38 = vsub.f32 %v1391_v4, %v1546_v25  ;;  %v565_v39 = vsub.f32 %v1394_v5, %v1548_v26  ;;  %v611_v25 = vsel %vm609_vm3, %v580_v15, 0.0  ;;  %v610_v26 = vsel %vm609_vm3, %v578_v16, 0.0 }
  0x9f   : > { %v748_v49 = vsel %vm746_vm5, %v732_v24, 0.0  ;;  %v612_v53 = vadd.f32 %v611_v25, %v610_v26 }
  0xa0   : > { %v581_v51 = vand.u32 2147483647, %v565_v39  ;;  %v749_v24 = vadd.f32 %v748_v49, %v747_v18 }
  0xa1   : > { %v1550_v27 = vpop.permute.xlu1 %676  ;;  %v1552_v29 = vpop.permute.xlu0 %674 }
  0xa2   : > { %v719_v19 = vsub.f32 %v1391_v4, %v1550_v27  ;;  %v718_v20 = vsub.f32 %v1394_v5, %v1552_v29  ;;  %v764_v27 = vsel %vm762_vm4, %v733_v22, 0.0 }
  0xa3   : > { %v765_v22 = vadd.f32 %v764_v27, %v763_v17 }
  0xa4   : > { %v735_v52 = vand.u32 2147483647, %v719_v19  ;;  %v734_v54 = vand.u32 2147483647, %v718_v20  ;;  %v597_v19 = vsel %vm593_vm2, %v581_v51, 0.0 }
  0xa5   : > { %v1554_v30 = vpop.permute.xlu1 %527  ;;  %v1556_v31 = vpop.permute.xlu0 %525 }
  0xa6   : > { %v568_v43 = vsub.f32 %v1405_v6, %v1554_v30  ;;  %v567_v44 = vsub.f32 %v1408_v7, %v1556_v31  ;;  %v582_v31 = vand.u32 2147483647, %v566_v38 }
  0xa8   : > { %v584_v55 = vand.u32 2147483647, %v568_v43  ;;  %v583_v59 = vand.u32 2147483647, %v567_v44  ;;  %v613_v39 = vsel %vm609_vm3, %v582_v31, 0.0  ;;  %v766_v43 = vsel %vm762_vm4, %v735_v52, 0.0 }
  0xa9   : > { %v1565_v32 = vpop.permute.xlu1 %680  ;;  %v1567_v34 = vpop.permute.xlu0 %678  ;;  %v750_v44 = vsel %vm746_vm5, %v734_v54, 0.0 }
  0xaa   : > { %v721_v29 = vsub.f32 %v1405_v6, %v1565_v32  ;;  %v720_v30 = vsub.f32 %v1408_v7, %v1567_v34 }
  0xac   : > { %v737_v37 = vand.u32 2147483647, %v721_v29  ;;  %v736_v38 = vand.u32 2147483647, %v720_v30  ;;  %v614_v29 = vadd.f32 %v613_v39, %v612_v53 }
  0xad   : > { %v1575_v41 = vpop.permute.xlu1 %531  ;;  %v1577_v42 = vpop.permute.xlu0 %529 }
  0xae   : > { %v570_v32 = vsub.f32 %v1419_v8, %v1575_v41  ;;  %v569_v34 = vsub.f32 %v1422_v9, %v1577_v42  ;;  %v615_v41 = vsel %vm609_vm3, %v584_v55, 0.0  ;;  %v599_v42 = vsel %vm593_vm2, %v583_v59, 0.0 }
  0xaf   : > { %v752_v30 = vsel %vm746_vm5, %v736_v38, 0.0  ;;  %v767_v55 = vadd.f32 %v766_v43, %v765_v22  ;;  %v751_v59 = vadd.f32 %v750_v44, %v749_v24  ;;  %v616_v17 = vadd.f32 %v615_v41, %v614_v29 }
  0xb0   : > { %v586_v47 = vand.u32 2147483647, %v570_v32  ;;  %v585_v48 = vand.u32 2147483647, %v569_v34 }
  0xb1   : > { %v1600_v60 = vpop.permute.xlu1 %684  ;;  %v1602_v63 = vpop.permute.xlu0 %682 }
  0xb2   : > { %v723_v31 = vsub.f32 %v1419_v8, %v1600_v60  ;;  %v722_v51 = vsub.f32 %v1422_v9, %v1602_v63  ;;  %v601_v53 = vsel %vm593_vm2, %v585_v48, 0.0 }
  0xb5   : > { %v536_v45 = vpop.permute.xlu1 %535  ;;  %v534_v46 = vpop.permute.xlu0 %533 }
  0xb6   : > { %v572_v40 = vsub.f32 %v1441_v10, %v536_v45  ;;  %v571_v20 = vsub.f32 %v1445_v11, %v534_v46  ;;  %v598_v45 = vadd.f32 %v597_v19, %v596_v50  ;;  %v768_v46 = vsel %vm762_vm4, %v737_v37, 0.0 }
  0xb7   : > { %v617_v50 = vsel %vm609_vm3, %v586_v47, 0.0  ;;  %v769_v39 = vadd.f32 %v768_v46, %v767_v55  ;;  %v753_v19 = vadd.f32 %v752_v30, %v751_v59 }
  0xb8   : > { %v588_v52 = vand.u32 2147483647, %v572_v40  ;;  %v587_v54 = vand.u32 2147483647, %v571_v20  ;;  %v600_v18 = vadd.f32 %v599_v42, %v598_v45  ;;  %v739_v40 = vand.u32 2147483647, %v723_v31 }
  0xb9   : > { %v689_v15 = vpop.permute.xlu1 %688  ;;  %v687_v16 = vpop.permute.xlu0 %686  ;;  %v738_v20 = vand.u32 2147483647, %v722_v51  ;;  %v618_v43 = vadd.f32 %v617_v50, %v616_v17 }
  0xba   : > { %v725_v60 = vsub.f32 %v1441_v10, %v689_v15  ;;  %v724_v63 = vsub.f32 %v1445_v11, %v687_v16  ;;  %v619_v22 = vsel %vm609_vm3, %v588_v52, 0.0  ;;  %v603_v24 = vsel %vm593_vm2, %v587_v54, 0.0 }
  0xbb   : > { %v602_v44 = vadd.f32 %v601_v53, %v600_v18  ;;  %v770_v46 = vsel %vm762_vm4, %v739_v40, 0.0  ;;  %v754_v30 = vsel %vm746_vm5, %v738_v20, 0.0 }
  0xbc   : > { %v741_v29 = vand.u32 2147483647, %v725_v60  ;;  %v740_v45 = vand.u32 2147483647, %v724_v63  ;;  %v771_v40 = vadd.f32 %v770_v46, %v769_v39  ;;  %v755_v20 = vadd.f32 %v754_v30, %v753_v19  ;;  %v306_v39 = vld [vmem:[%s1563_s14 + $0x40] sm:$0xff] }
  0xbd   : > { %v540_v25 = vpop.permute.xlu1 %539  ;;  %v538_v26 = vpop.permute.xlu0 %537  ;;  %v307_v19 = vld [vmem:[%s1563_s14 + $0x48] sm:$0xf]  ;;  %v383_v30 = vsel %vm381_vm8, %v1617_v36, 0.0 }
  0xbe   : > { %v574_v27 = vsub.f32 %v1481_v28, %v540_v25  ;;  %v573_v49 = vsub.f32 %v1488_v33, %v538_v26 }
  0xc0   : > { %v590_v37 = vand.u32 2147483647, %v574_v27  ;;  %v589_v38 = vand.u32 2147483647, %v573_v49  ;;  %v620_v27 = vadd.f32 %v619_v22, %v618_v43  ;;  %v604_v49 = vadd.f32 %v603_v24, %v602_v44 }
  0xc1   : > { %v693_v32 = vpop.permute.xlu1 %692  ;;  %v691_v34 = vpop.permute.xlu0 %690 }
  0xc2   : > { %v727_v41 = vsub.f32 %v1481_v28, %v693_v32  ;;  %v726_v42 = vsub.f32 %v1488_v33, %v691_v34  ;;  %v621_v47 = vsel %vm609_vm3, %v590_v37, 0.0  ;;  %v605_v15 = vsel %vm593_vm2, %v589_v38, 0.0 }
  0xc3   : > { %v622_v52 = vadd.f32 %v621_v47, %v620_v27  ;;  %v606_v54 = vadd.f32 %v605_v15, %v604_v49  ;;  %v772_v37 = vsel %vm762_vm4, %v741_v29, 0.0  ;;  %v756_v38 = vsel %vm746_vm5, %v740_v45, 0.0 }
  0xc4   : > { %v743_v55 = vand.u32 2147483647, %v727_v41  ;;  %v742_v59 = vand.u32 2147483647, %v726_v42  ;;  %v773_v47 = vadd.f32 %v772_v37, %v771_v40  ;;  %v757_v15 = vadd.f32 %v756_v38, %v755_v20  ;;  %v311_v40 = vld [vmem:[%s1563_s14 + $0x68] sm:$0xf] }
  0xc5   : > { %v544_v25 = vpop.permute.xlu1 %543  ;;  %v542_v26 = vpop.permute.xlu0 %541  ;;  %v366_v29 = vsel %vm365_vm10, %v1607_v13, 0.0  ;;  %v367_v45 = vsel %vm365_vm10, %v1615_v35, 0.0  ;;  %v342_v13 = vsub.f32 %v307_v19, %v1419_v8 }
  0xc6   : > { %v576_v16 = vsub.f32 %v1464_v21, %v544_v25  ;;  %v575_v48 = vsub.f32 %v1474_v23, %v542_v26  ;;  %v774_v43 = vsel %vm762_vm4, %v743_v55, 0.0  ;;  %v758_v44 = vsel %vm746_vm5, %v742_v59, 0.0 }
  0xc7   : > { %v353_v25 = vmul.f32 %v1592_v56, %v1592_v56  ;;  %v354_v26 = vmul.f32 %v1595_v57, %v1595_v57  ;;  %v775_v56 = vadd.f32 %v774_v43, %v773_v47  ;;  %v759_v46 = vadd.f32 %v758_v44, %v757_v15  ;;  %v313_v47 = vld [vmem:[%s1563_s14 + $0x78] sm:$0xf] }
  0xc8   : > { %v592_v31 = vand.u32 2147483647, %v576_v16  ;;  %v591_v51 = vand.u32 2147483647, %v575_v48  ;;  %v382_v57 = vsel %vm381_vm8, %v1609_v14, 0.0  ;;  %v355_v59 = vmul.f32 %v1598_v58, %v1598_v58 }
  0xc9   : > { %v697_v17 = vpop.permute.xlu1 %696  ;;  %v695_v18 = vpop.permute.xlu0 %694  ;;  %v368_v14 = vadd.f32 %v367_v45, %v366_v29  ;;  %v385_v37 = vsel %vm381_vm8, %v354_v26, 0.0  ;;  %v312_v26 = vld [vmem:[%s1563_s14 + $0x70] sm:$0xff] }
  0xca   : > { %v623_v32 = vsel %vm609_vm3, %v592_v31, 0.0  ;;  %v607_v34 = vsel %vm593_vm2, %v591_v51, 0.0  ;;  %v729_v50 = vsub.f32 %v1464_v21, %v697_v17  ;;  %v728_v53 = vsub.f32 %v1474_v23, %v695_v18 }
  0xcb   : > { %v624_v60 = vadd.f32 %v623_v32, %v622_v52  ;;  %v608_v63 = vadd.f32 %v607_v34, %v606_v54  ;;  %v341_v51 = vsub.f32 %v306_v39, %v1422_v9  ;;  %v356_v17 = vmul.f32 %v1605_v12, %v1605_v12  ;;  %v308_v34 = vld [vmem:[%s1563_s14 + $0x50] sm:$0xff] }
  0xcc   : > { %v745_v22 = vand.u32 2147483647, %v729_v50  ;;  %v744_v24 = vand.u32 2147483647, %v728_v53  ;;  %v384_v18 = vadd.f32 %v383_v30, %v382_v57  ;;  %v309_v50 = vld [vmem:[%s1563_s14 + $0x58] sm:$0xf]  ;;  %v343_v58 = vsub.f32 %v308_v34, %v1445_v11 }
  0xcd   : > { %v638_v41 = vpop.permute.xlu1 %637  ;;  %v636_v42 = vpop.permute.xlu0 %635  ;;  %v369_v53 = vsel %vm365_vm10, %v353_v25, 0.0  ;;  %v344_v12 = vsub.f32 %v309_v50, %v1441_v10  ;;  %v357_v20 = vmul.f32 %v341_v51, %v341_v51  ;;  %v387_v43 = vsel %vm381_vm8, %v356_v17, 0.0 }
  0xce   : > { %v642_v16 = vmul.f32 %v638_v41, %v624_v60  ;;  %v641_v48 = vmul.f32 %v636_v42, %v608_v63  ;;  %v776_v27 = vsel %vm762_vm4, %v745_v22, 0.0  ;;  %v760_v49 = vsel %vm746_vm5, %v744_v24, 0.0  ;;  %v310_v63 = vld [vmem:[%s1563_s14 + $0x60] sm:$0xff] }
  0xcf   : > { %v777_v52 = vadd.f32 %v776_v27, %v775_v56  ;;  %v761_v35 = vadd.f32 %v760_v49, %v759_v46  ;;  %v370_v38 = vadd.f32 %v369_v53, %v368_v14  ;;  %v386_v60 = vadd.f32 %v385_v37, %v384_v18 }
  0xd0   : > { %647 = vrot.lane.b32.xlu0 %v642_v16, %s1267_s21  ;;  %645 = vrot.lane.b32.xlu1 %v641_v48, %s1267_s21  ;;  %v358_v22 = vmul.f32 %v342_v13, %v342_v13  ;;  %v371_v24 = vsel %vm365_vm10, %v355_v59, 0.0  ;;  %v345_v44 = vsub.f32 %v310_v63, %v1488_v33  ;;  %v346_v41 = vsub.f32 %v311_v40, %v1481_v28  ;;  %s1101_s21 = sshll.u32 %s1254_s18, 7  ;;  %s1269_s18 = smov [#allocation2]  }
  0xd1   : > { %v1181_v31 = vpop.permute.xlu0 %1180  ;;  %v372_v42 = vadd.f32 %v371_v24, %v370_v38  ;;  %v388_v25 = vadd.f32 %v387_v43, %v386_v60  ;;  %v359_v15 = vmul.f32 %v343_v58, %v343_v58  ;;  %v360_v16 = vmul.f32 %v344_v12, %v344_v12 }
  0xd2   : > { %v1183_v54 = vunpack.i.h.bf16 %v1181_v31  ;;  %v1182_v55 = vunpack.i.l.bf16 %v1181_v31  ;;  %v373_v48 = vsel %vm365_vm10, %v357_v20, 0.0  ;;  %v389_v39 = vsel %vm381_vm8, %v358_v22, 0.0 }
  0xd3   : > { %v347_v19 = vsub.f32 %v312_v26, %v1474_v23  ;;  %v348_v27 = vsub.f32 %v313_v47, %v1464_v21  ;;  %v374_v49 = vadd.f32 %v373_v48, %v372_v42  ;;  %v390_v29 = vadd.f32 %v389_v39, %v388_v25 }
  0xd4   : > { %v787_v36 = vmul.f32 %v1183_v54, %v777_v52  ;;  %v786_v32 = vmul.f32 %v1182_v55, %v761_v35  ;;  %v361_v45 = vmul.f32 %v345_v44, %v345_v44  ;;  %v362_v56 = vmul.f32 %v346_v41, %v346_v41 }
  0xd5   : > { %v375_v46 = vsel %vm365_vm10, %v359_v15, 0.0  ;;  %v391_v57 = vsel %vm381_vm8, %v360_v16, 0.0  ;;  %v363_v51 = vmul.f32 %v347_v19, %v347_v19  ;;  %v364_v13 = vmul.f32 %v348_v27, %v348_v27 }
  0xd6   : > { %792 = vrot.lane.b32.xlu0 %v787_v36, %s1268_s22  ;;  %790 = vrot.lane.b32.xlu1 %v786_v32, %s1268_s22  ;;  %v376_v30 = vadd.f32 %v375_v46, %v374_v49  ;;  %v392_v31 = vadd.f32 %v391_v57, %v390_v29  ;;  %v377_v52 = vsel %vm365_vm10, %v361_v45, 0.0  ;;  %v393_v35 = vsel %vm381_vm8, %v362_v56, 0.0  ;;  %v330_v36 = vld [vmem:[%s296_s5] sm:$0xff]  ;;  %v331_v32 = vld [vmem:[%s296_s5 + $0x8] sm:$0xf]  ;;  %s267_s22 = scalar_lea.vmem [#allocation2], %s1092_s11  ;;  %s1808_s5 = scalar_lea.hbm %s1859_s4, %s1101_s21 }
  0xd7   : > { %v379_v59 = vsel %vm365_vm10, %v363_v51, 0.0  ;;  %v395_v17 = vsel %vm381_vm8, %v364_v13, 0.0  ;;  %v411_v34 = vsel %vm365_vm10, %v330_v36, 0.0  ;;  %v412_v50 = vsel %vm381_vm8, %v331_v32, 0.0  ;;  %s977_s24 = sshll.u32 %s267_s22, 4  ;;  %s1810_s24 = int_to_ptr.vmem [resolvable:$true] %s977_s24 }
  0xd8   : > { %v378_v54 = vadd.f32 %v377_v52, %v376_v30  ;;  %v394_v55 = vadd.f32 %v393_v35, %v392_v31  ;;  %v413_v58 = vadd.f32 %v412_v50, %v411_v34  ;;  %v485_v12 = vsel %vm365_vm10, %v1526_v62, 0.0 }
  0xd9   : > { %v486_v38 = vsel %vm381_vm8, %v1524_v61, 0.0  ;;  %v812_v22 = vrot.slane %v1366_v1, 7  ;;  %v813_v24 = vrot.slane %v1376_v3, 7  ;;  %v815_v43 = vrot.slane %v1363_v0, 7 }
  0xda   : > { %v380_v14 = vadd.f32 %v379_v59, %v378_v54  ;;  %v396_v18 = vadd.f32 %v395_v17, %v394_v55  ;;  %v487_v40 = vadd.f32 %v486_v38, %v485_v12  ;;  %v816_v44 = vrot.slane %v1373_v2, 7 }
  0xdb   : > { %v818_v41 = vrot.slane %v1394_v5, 7  ;;  %v819_v42 = vrot.slane %v1391_v4, 7  ;;  %v814_v25 = vsel %vm811_vm6, %v812_v22, %v813_v24  ;;  %v821_v47 = vrot.slane %v1408_v7, 7 }
  0xdc   : > { %v397_v53 = vmul.f32 %v380_v14, %v330_v36  ;;  %v398_v37 = vmul.f32 %v396_v18, %v331_v32  ;;  %v817_v26 = vsel %vm811_vm6, %v815_v43, %v816_v44  ;;  %v822_v15 = vrot.slane %v1405_v6, 7 }
  0xdd   : > { %v852_v16 = vsub.f32 %v1366_v1, %v812_v22  ;;  %v820_v48 = vsel %vm811_vm6, %v818_v41, %v819_v42  ;;  %v853_v39 = vsub.f32 %v1376_v3, %v814_v25  ;;  %v854_v19 = vsub.f32 %v1363_v0, %v815_v43 }
  0xde   : > { %v399_v60 = vsel %vm365_vm10, %v397_v53, 0.0  ;;  %v400_v63 = vsel %vm381_vm8, %v398_v37, 0.0  ;;  %v855_v27 = vsub.f32 %v1373_v2, %v817_v26  ;;  %v824_v49 = vrot.slane %v1422_v9, 7 }
  0xdf   : > { %v401_v20 = vadd.f32 %v400_v63, %v399_v60  ;;  %v825_v29 = vrot.slane %v1419_v8, 7  ;;  %v856_v45 = vsub.f32 %v1394_v5, %v818_v41  ;;  %v857_v56 = vsub.f32 %v1391_v4, %v820_v48 }
  0xe0   : > { %v868_v46 = vand.u32 2147483647, %v852_v16  ;;  %v823_v57 = vsel %vm811_vm6, %v821_v47, %v822_v15  ;;  %v869_v1 = vand.u32 2147483647, %v853_v39  ;;  %v870_v30 = vand.u32 2147483647, %v854_v19 }
  0xe1   : > { %v871_v31 = vand.u32 2147483647, %v855_v27  ;;  %v826_v3 = vsel %vm811_vm6, %v824_v49, %v825_v29  ;;  %v827_v0 = vrot.slane %v1445_v11, 7  ;;  %v828_v2 = vrot.slane %v1441_v10, 7 }
  0xe2   : > { %v858_v51 = vsub.f32 %v1408_v7, %v821_v47  ;;  %v859_v13 = vsub.f32 %v1405_v6, %v823_v57  ;;  %v872_v5 = vand.u32 2147483647, %v856_v45  ;;  %v873_v52 = vand.u32 2147483647, %v857_v56 }
  0xe3   : > { %v885_v4 = vsel %vm884_vm7, %v868_v46, 0.0  ;;  %v886_v35 = vsel %vm884_vm7, %v870_v30, 0.0  ;;  %v900_v54 = vsel %vm381_vm8, %v869_v1, 0.0  ;;  %v901_v55 = vsel %vm381_vm8, %v871_v31, 0.0 }
  0xe4   : > { %v829_v59 = vsel %vm811_vm6, %v827_v0, %v828_v2  ;;  %v830_v17 = vrot.slane %v1488_v33, 7  ;;  %v831_v14 = vrot.slane %v1481_v28, 7  ;;  %v860_v7 = vsub.f32 %v1422_v9, %v824_v49 }
  0xe5   : > { %v861_v6 = vsub.f32 %v1419_v8, %v826_v3  ;;  %v887_v18 = vadd.f32 %v886_v35, %v885_v4  ;;  %v902_v36 = vadd.f32 %v901_v55, %v900_v54  ;;  %v874_v32 = vand.u32 2147483647, %v858_v51 }
  0xe6   : > { %v875_v34 = vand.u32 2147483647, %v859_v13  ;;  %v888_v50 = vsel %vm884_vm7, %v872_v5, 0.0  ;;  %v903_v53 = vsel %vm381_vm8, %v873_v52, 0.0  ;;  %v832_v37 = vsel %vm811_vm6, %v830_v17, %v831_v14 }
  0xe7   : > { %v834_v12 = vrot.slane %v1464_v21, 7  ;;  %v862_v38 = vsub.f32 %v1445_v11, %v827_v0  ;;  %v863_v9 = vsub.f32 %v1441_v10, %v829_v59  ;;  %v889_v60 = vadd.f32 %v888_v50, %v887_v18 }
  0xe8   : > { %v904_v8 = vadd.f32 %v903_v53, %v902_v36  ;;  %v876_v63 = vand.u32 2147483647, %v860_v7  ;;  %v905_v22 = vsel %vm381_vm8, %v875_v34, 0.0  ;;  %v864_v43 = vsub.f32 %v1488_v33, %v830_v17 }
  0xe9   : > { %v865_v44 = vsub.f32 %v1481_v28, %v832_v37  ;;  %v878_v25 = vand.u32 2147483647, %v862_v38  ;;  %v879_v11 = vand.u32 2147483647, %v863_v9  ;;  %v915_v30 = vrot.slane %v1526_v62, 7 }
  0xea   : > { %v906_v42 = vadd.f32 %v905_v22, %v904_v8  ;;  %v892_v10 = vsel %vm884_vm7, %v876_v63, 0.0  ;;  %v880_v39 = vand.u32 2147483647, %v864_v43  ;;  %v916_v31 = vrot.slane %v1524_v61, 7 }
  0xeb   : > { %v881_v19 = vand.u32 2147483647, %v865_v44  ;;  %v894_v33 = vsel %vm884_vm7, %v878_v25, 0.0  ;;  %v909_v28 = vsel %vm381_vm8, %v879_v11, 0.0 }
  0xec   : > { %v896_v56 = vsel %vm884_vm7, %v880_v39, 0.0  ;;  %v917_v2 = vsel %vm811_vm6, %v915_v30, %v916_v31  ;;  %v944_v31 = vlaneseq }
  0xed   : > { %v911_v46 = vsel %vm381_vm8, %v881_v19, 0.0 }
  0xf5   : > { %414 = vadd.xlane.f32.xlu0 %v413_v58  ;;  %v833_v58 = vrot.slane %v1474_v23, 7 }
  0xf7   : > { %v835_v24 = vsel %vm811_vm6, %v833_v58, %v834_v12  ;;  %v866_v47 = vsub.f32 %v1474_v23, %v833_v58 }
  0xf8   : > { %v867_v15 = vsub.f32 %v1464_v21, %v835_v24 }
  0xf9   : > { %488 = vadd.xlane.f32.xlu0 %v487_v40  ;;  %v877_v40 = vand.u32 2147483647, %v861_v6  ;;  %v882_v29 = vand.u32 2147483647, %v866_v47 }
  0xfa   : > { %402 = vadd.xlane.f32.xlu1 %v401_v20  ;;  %v890_v20 = vsel %vm884_vm7, %v874_v32, 0.0  ;;  %v883_v45 = vand.u32 2147483647, %v867_v15 }
  0xfb   : > { %v891_v41 = vadd.f32 %v890_v20, %v889_v60  ;;  %v907_v26 = vsel %vm381_vm8, %v877_v40, 0.0  ;;  %v898_v21 = vsel %vm884_vm7, %v882_v29, 0.0 }
  0xfc   : > { %v908_v48 = vadd.f32 %v907_v26, %v906_v42  ;;  %v913_v1 = vsel %vm381_vm8, %v883_v45, 0.0  ;;  %vm798_vm8 = vcmask 453632  }
  0xfd   : > { %v893_v16 = vadd.f32 %v892_v10, %v891_v41 }
  0xfe   : > { %v910_v49 = vadd.f32 %v909_v28, %v908_v48 }
  0xff   : > { %v895_v27 = vadd.f32 %v894_v33, %v893_v16 }
 0x100   : > { %v912_v23 = vadd.f32 %v911_v46, %v910_v49 }
 0x101   : > { %v897_v57 = vadd.f32 %v896_v56, %v895_v27 }
 0x102   : > { %v914_v0 = vadd.f32 %v913_v1, %v912_v23 }
 0x103   : > { %v899_v3 = vadd.f32 %v898_v21, %v897_v57 }
 0x104   : > { %v921_v13 = vmul.f32 %v917_v2, %v914_v0 }
 0x105   : > { %v920_v51 = vmul.f32 %v915_v30, %v899_v3  ;;  %v945_v3 = vshrl.u32 %v944_v31, 7 }
 0x106   : > { %v926_v52 = vrot.slane %v921_v13, 1 }
 0x107   : > { %v925_v5 = vrot.slane %v920_v51, 1  ;;  %vm949_vm15 = vcmp.eq.s32.totalorder %v945_v3, 1  ;;  %vm953_vm0 = vcmp.eq.s32.totalorder %v945_v3, 2  ;;  %vm957_vm1 = vcmp.eq.s32.totalorder %v945_v3, 3 }
 0x108   : > { %v932_v61 = vsel %vm931_vm13, %v926_v52, 0.0 }
 0x109   : > { %v927_v4 = vsel %vm924_vm9, %v925_v5, %v926_v52 }
 0x10a   : > { %v930_v62 = vsel %vm365_vm10, %v927_v4, 0.0  ;;  %vm946_vm10 = vcmp.eq.s32.totalorder %v945_v3, 0 }
 0x10b   : > { %v933_v14 = vadd.f32 %v932_v61, %v930_v62 }
 0x142   : > { %v646_v35 = vpop.permute.xlu1 %645  ;;  %v648_v54 = vpop.permute.xlu0 %647 }
 0x143   : > { %v652_v55 = vsel %vm651_vm11, %v646_v35, 0.0  ;;  %v654_v59 = vsel %vm653_vm12, %v648_v54, 0.0 }
 0x144   : > { %v655_v17 = vadd.f32 %v654_v59, %v652_v55 }
 0x146   : > { %656 = vadd.xlane.f32.xlu1 %v655_v17 }
 0x148   : > { %v793_v7 = vpop.permute.xlu0 %792  ;;  %v791_v6 = vpop.permute.xlu1 %790 }
 0x149   : > { %v799_v18 = vsel %vm798_vm8, %v793_v7, 0.0  ;;  %v797_v36 = vsel %vm796_vm14, %v791_v6, 0.0 }
 0x14a   : > { %934 = vadd.xlane.f32.xlu1 %v933_v14  ;;  %v800_v32 = vadd.f32 %v799_v18, %v797_v36 }
 0x14c   : > { %801 = vadd.xlane.f32.xlu0 %v800_v32 }
 0x182   : > { %v415_v34 = vpop.xlane.xlu0 %414 }
 0x183   : > { %v416_v50 = vrot.slane %v415_v34, 4 }
 0x185   : > { %v417_v53 = vadd.f32 %v416_v50, %v415_v34 }
 0x186   : > { %v489_v37 = vpop.xlane.xlu0 %488 }
 0x187   : > { %v418_v58 = vrot.slane %v417_v53, 2  ;;  %v403_v12 = vpop.xlane.xlu1 %402  ;;  %v490_v38 = vrot.slane %v489_v37, 4 }
 0x188   : > { %v404_v9 = vrot.slane %v403_v12, 4 }
 0x189   : > { %v491_v60 = vadd.f32 %v490_v38, %v489_v37  ;;  %v419_v8 = vadd.f32 %v418_v58, %v417_v53 }
 0x18a   : > { %v405_v63 = vadd.f32 %v404_v9, %v403_v12 }
 0x18b   : > { %v492_v40 = vrot.slane %v491_v60, 2  ;;  %v420_v22 = vrot.slane %v419_v8, 1 }
 0x18c   : > { %v406_v20 = vrot.slane %v405_v63, 2 }
 0x18d   : > { %v493_v24 = vadd.f32 %v492_v40, %v491_v60  ;;  %v421_v42 = vadd.f32 %v420_v22, %v419_v8 }
 0x18e   : > { %v407_v43 = vadd.f32 %v406_v20, %v405_v63 }
 0x18f   : > { %v494_v44 = vrot.slane %v493_v24, 1 }
 0x190   : > { %v408_v41 = vrot.slane %v407_v43, 1 }
 0x191   : > { %v495_v11 = vadd.f32 %v494_v44, %v493_v24 }
 0x192   : > { %v409_v25 = vadd.f32 %v408_v41, %v407_v43 }
 0x194   : > { %1107 = vpush %v409_v25 }
 0x195   : > { %1109 = vpush %v421_v42 }
 0x196   : > { %1111 = vpush %v495_v11 }
 0x1c5   : > { %s1108_s29 = spop %1107 }
 0x1c6   : > { %s1110_s6 = spop %1109  ;;  %v947_v0 = vstv %s1108_s29  ;;  %s963_s29 = scalar_lea.sflag [#allocation3], %s265_s7 }
 0x1c7   : > { %s1112_s8 = spop %1111  ;;  %v950_v2 = vstv %s1110_s6  ;;  %v948_v51 = vsel %vm946_vm10, %v947_v0, 0.0  ;;  %s1184_s6 = scalar_lea.vmem %s1810_s24, 128 }
 0x1c8   : > { %v951_v13 = vsel %vm949_vm15, %v950_v2, 0.0  ;;  %v958_v52 = vstv %s1112_s8  ;;  %p1185_p12 = scmp.ne.s32.totalorder %s1810_s24, %s1184_s6  ;;  %s1188_s8 = sshll.u32 %s1269_s18, 4  ;;  %s1189_s8 = int_to_ptr.vmem [resolvable:$false] %s1188_s8 }
 0x1c9   : > { %v952_v5 = vadd.f32 %v951_v13, %v948_v51  ;;  %v959_v55 = vsel %vm957_vm1, %v958_v52, 0.0  ;;  %p1191_p1 = scmp.lt.s32.totalorder %s1810_s24, %s1189_s8 }
 0x1ca   : > { %p1186_p13 = pnand %p1185_p12, %p1335_p4 }
 0x1cc   : > { %p1187_p0 = pneg %p1186_p13 }
 0x1d3   : > { %v657_v10 = vpop.xlane.xlu1 %656 }
 0x1d4   : > { %v658_v26 = vrot.slane %v657_v10, 4 }
 0x1d6   : > { %v659_v47 = vadd.f32 %v658_v26, %v657_v10 }
 0x1d7   : > { %v935_v15 = vpop.xlane.xlu1 %934 }
 0x1d8   : > { %v660_v16 = vrot.slane %v659_v47, 2  ;;  %v936_v48 = vrot.slane %v935_v15, 4 }
 0x1d9   : > { %v802_v39 = vpop.xlane.xlu0 %801 }
 0x1da   : > { %v937_v19 = vadd.f32 %v936_v48, %v935_v15  ;;  %v803_v33 = vrot.slane %v802_v39, 4  ;;  %v661_v28 = vadd.f32 %v660_v16, %v659_v47 }
 0x1dc   : > { %v938_v27 = vrot.slane %v937_v19, 2  ;;  %v804_v49 = vadd.f32 %v803_v33, %v802_v39  ;;  %v662_v29 = vrot.slane %v661_v28, 1 }
 0x1de   : > { %v939_v45 = vadd.f32 %v938_v27, %v937_v19  ;;  %v805_v56 = vrot.slane %v804_v49, 2  ;;  %v663_v46 = vadd.f32 %v662_v29, %v661_v28 }
 0x1e0   : > { %v806_v57 = vadd.f32 %v805_v56, %v804_v49  ;;  %1113 = vpush %v663_v46  ;;  %v940_v23 = vrot.slane %v939_v45, 1 }
 0x1e2   : > { %v807_v21 = vrot.slane %v806_v57, 1  ;;  %v941_v30 = vadd.f32 %v940_v23, %v939_v45 }
 0x1e4   : > { %v808_v1 = vadd.f32 %v807_v21, %v806_v57 }
 0x1e6   : > { %1115 = vpush %v808_v1 }
 0x1e7   : > { %1117 = vpush %v941_v30 }
 0x211   : > { %s1114_s9 = spop %1113 }
 0x217   : > { %s1116_s10 = spop %1115 }
 0x218   : > { %s810_s12 = sadd.f32 %s1116_s10, %s1114_s9  ;;  %s1118_s13 = spop %1117 }
 0x219   : > { %s1190_s9 = scalar_lea.vmem %s1189_s8, 256 }
 0x21a   : > { %s943_s14 = sadd.f32 %s1118_s13, %s810_s12  ;;  %p1192_p2 = scmp.lt.s32.totalorder %s1190_s9, %s1184_s6 }
 0x21c   : > { %v954_v4 = vstv %s943_s14  ;;  %p1193_p3 = por %p1192_p2, %p1191_p1 }
 0x21d   : > { %v955_v35 = vsel %vm953_vm0, %v954_v4, 0.0 }
 0x21e   : > { %v956_v54 = vadd.f32 %v955_v35, %v952_v5  ;;  %p1194_p5 = pnand %p1193_p3, %p1187_p0 }
 0x220   : > { %v960_v59 = vadd.f32 %v959_v55, %v956_v54 }
 0x222   : > { %961 = vst [vmem:[%s267_s22] sm:$0xff] %v960_v59 }
 0x223   : > { %1197 = shalt.err (!%p1194_p5)
}
 0x224   : > { %s1198_s7 = scalar_lea.hbm %s1808_s5, 128  ;;  %s1202_s12 = scalar_lea.hbm %s1859_s4, 256 }
 0x225   : > { %p1199_p6 = scmp.ne.s32.totalorder %s1808_s5, %s1198_s7  ;;  %p1203_p10 = scmp.lt.u32.totalorder %s1808_s5, %s1859_s4 }
 0x226   : > { %p1204_p11 = scmp.lt.u32.totalorder %s1202_s12, %s1198_s7  ;;  %p1206_p13 = scmp.lt.u32.totalorder %s1198_s7, %s1808_s5 }
 0x227   : > { %p1200_p7 = pnand %p1199_p6, %p1335_p4 }
 0x228   : > { %p1205_p12 = por %p1204_p11, %p1203_p10 }
 0x229   : > { %p1201_p9 = pneg %p1200_p7 }
 0x22a   : > { %p1207_p0 = por %p1206_p13, %p1205_p12 }
 0x22c   : > { %p1208_p1 = pnand %p1207_p0, %p1201_p9 }
 0x22e   : > { %1211 = shalt.err (!%p1208_p1)
}
 0x22f   : > { %1119 = dma.vmem_to_hbm [thread:$0]  (%p1335_p4), %s1810_s24, 128, %s1808_s5, %s963_s29  }
 0x230 PF: > { %p1125_p2 = scmp.ge.s32.totalorder %s1262_s20, 2  ;;  %s989_s21 = sand.u32 1, %s1242_s15  }
 0x231   : > { %s990_s22 = scalar_lea.sflag [#allocation3], %s989_s21 }
 0x232   : > { %p1122_p3 = pnand %p1125_p2, %p1342_p8 }
 0x234   : > { %1237 = dma.done.wait (!%p1122_p3), %s990_s22, 128  }
 0x235   : > { %1239 = vsyncadd (!%p1122_p3), %s990_s22, 4294967168  ;;  %s17_s20 = sadd.s32 1, %s1262_s20   ;;  %s1862_s15 = smov %s1246_s16 }
 0x236   : > { %p14_p5 = scmp.ge.s32.totalorder %s17_s20, 4   ;;  %s1863_s16 = smov %s1250_s17 }
 0x237   : > { %s1864_s17 = smov %s1348_s28  ;;  %s1865_s18 = smov %s1258_s19 }
 0x238   : > { %s1866_s19 = smov %s1868_s23  ;;  %16 = sbr.rel (!%p14_p5) target bundleno = 4 (0x4), region = 77 }
 0x23f   :  { %995 = vsyncpa [#allocation3], 1 }
 0x240   :  { %997 = vsyncpa [#allocation3 + $0x1], 1 }

</bundles_post_ra>
